<compile_context>
chip_gen: v6e
topology: v6e:2x2x1
jax: 0.10.0
libtpu: 0.0.40
codegen_flags: <defaults>
</compile_context>

<pallas_src>
import functools

import jax
import jax.numpy as jnp
from jax import lax
from jax.experimental import pallas as pl
from jax.experimental.pallas import tpu as pltpu

EPS = 1e-5

# Whole-array-in-VMEM spec: no grid, no index_map, no pipeline machinery.
_VMEM_SPEC = pl.BlockSpec(memory_space=pltpu.MemorySpace.VMEM)


def _make_train_kernel(m_real: int, eps: float):
    """conv1x1 + train-mode BatchNorm2d, fused.  m_real = true (unpadded) row count."""
    inv_m = 1.0 / float(m_real)

    def kernel(x_ref, w_ref, gb_ref, out_ref):
        # (Mp, Cin_p) @ (Cin_p, Cout_p) -> f32 accumulate on the MXU.
        h = jnp.dot(x_ref[...], w_ref[...], preferred_element_type=jnp.float32)
        # Per-channel batch statistics over the true rows.  Zero-padded rows contribute 0 to
        # both sums, so dividing by m_real gives the exact mean / biased variance.
        mean = jnp.sum(h, axis=0, keepdims=True) * inv_m
        var = jnp.sum(h * h, axis=0, keepdims=True) * inv_m - mean * mean
        var = jnp.maximum(var, 0.0)
        inv_std = lax.rsqrt(var + eps)                      # EUP, off the VALU
        gamma = gb_ref[0:1, :]
        beta = gb_ref[1:2, :]
        # Fold BN into a single per-channel FMA over the big slab: y = h * a + b.
        a = inv_std * gamma                                 # (1, Cout_p)
        b = beta - mean * a                                 # (1, Cout_p)
        out_ref[...] = h * a + b

    return kernel


def _eval_kernel(x_ref, w_ref, b_ref, out_ref):
    """Eval-mode BN is folded into W/b in the wrapper -> kernel is one matmul + bias add."""
    out_ref[...] = (
        jnp.dot(x_ref[...], w_ref[...], preferred_element_type=jnp.float32) + b_ref[...]
    )


@functools.partial(jax.jit, static_argnames=("training",))
def linear_block_forward(x, params, training=True):
    """x: (N, C_in, H, W) float32, NCHW (PyTorch layout).  Returns (N, C_out, H, W)."""
    N, Cin, H, W = x.shape
    Cout = params["w"].shape[0]          # torch conv weight layout: (Cout, Cin, 1, 1)
    M = N * H * W

    # NCHW -> (N*H*W, Cin): channels land on TPU lanes (layout plumbing, done by XLA).
    x2d = jnp.transpose(x, (0, 2, 3, 1)).reshape(M, Cin).astype(jnp.float32)
    w2d = params["w"].reshape(Cout, Cin).T.astype(jnp.float32)      # (Cin, Cout)

    # Lane/sublane-dense padding (sliced off after the kernel).
    Mp = M + (-M) % 8
    Cin_p = Cin + (-Cin) % 128
    Cout_p = Cout + (-Cout) % 128

    x_p = jnp.pad(x2d, ((0, Mp - M), (0, Cin_p - Cin)))
    gamma = params["g"].astype(jnp.float32)
    beta = params["be"].astype(jnp.float32)

    if training:
        w_p = jnp.pad(w2d, ((0, Cin_p - Cin), (0, Cout_p - Cout)))
        # Pack gamma/beta into a single (2, Cout_p) slab -> one DMA instead of two tiny rows.
        gb = jnp.stack(
            [jnp.pad(gamma, (0, Cout_p - Cout), constant_values=1.0),
             jnp.pad(beta, (0, Cout_p - Cout))],
            axis=0,
        )
        kernel = _make_train_kernel(M, EPS)
        operands = (x_p, w_p, gb)
    else:
        # Fold eval-mode BN affine into the conv: y = x @ (W*scale) + shift.
        scale = gamma * lax.rsqrt(params["rv"].astype(jnp.float32) + EPS)
        shift = beta - params["rm"].astype(jnp.float32) * scale
        w_f = jnp.pad(w2d * scale[None, :], ((0, Cin_p - Cin), (0, Cout_p - Cout)))
        b_row = jnp.pad(shift, (0, Cout_p - Cout)).reshape(1, Cout_p)
        kernel = _eval_kernel
        operands = (x_p, w_f, b_row)

    y_p = pl.pallas_call(
        kernel,
        out_shape=jax.ShapeDtypeStruct((Mp, Cout_p), jnp.float32),
        in_specs=[_VMEM_SPEC] * 3,
        out_specs=_VMEM_SPEC,
    )(*operands)

    y = y_p[:M, :Cout].reshape(N, H, W, Cout)
    return jnp.transpose(y, (0, 3, 1, 2))                  # back to NCHW


def init_params(key, in_c, out_c):
    kw, kg, kb, km, kv = jax.random.split(key, 5)
    return {
        # Conv2d weight (out, in, 1, 1), bias=False
        "w": jax.random.normal(kw, (out_c, in_c, 1, 1), jnp.float32) / (in_c ** 0.5),
        # BatchNorm2d affine + running stats (non-default values to exercise the code paths)
        "g": 1.0 + 0.1 * jax.random.normal(kg, (out_c,), jnp.float32),
        "be": 0.1 * jax.random.normal(kb, (out_c,), jnp.float32),
        "rm": 0.1 * jax.random.normal(km, (out_c,), jnp.float32),
        "rv": 1.0 + 0.1 * jnp.abs(jax.random.normal(kv, (out_c,), jnp.float32)),
    }


def _reference(x, p, training=True):
    """Pure-JAX reference: Conv2d(1x1, no bias) + BatchNorm2d, PyTorch semantics."""
    N, Cin, H, W = x.shape
    Cout = p["w"].shape[0]
    w = p["w"].reshape(Cout, Cin)
    h = jnp.dot(jnp.transpose(x, (0, 2, 3, 1)).reshape(-1, Cin), w.T, precision="highest")
    if training:
        mean = jnp.mean(h, axis=0)
        var = jnp.mean((h - mean) ** 2, axis=0)             # biased variance (train-mode BN)
    else:
        mean, var = p["rm"], p["rv"]
    y = (h - mean) / jnp.sqrt(var + EPS) * p["g"] + p["be"]
    return jnp.transpose(y.reshape(N, H, W, Cout), (0, 3, 1, 2))


if __name__ == "__main__":
    N, Cin, H, W, Cout = 2, 4, 16, 16, 8
    key = jax.random.PRNGKey(0)
    kx, kp = jax.random.split(key)
    x = jax.random.normal(kx, (N, Cin, H, W), jnp.float32)
    params = init_params(kp, Cin, Cout)

    y_train = linear_block_forward(x, params, training=True)
    y_eval = linear_block_forward(x, params, training=False)
    jax.block_until_ready((y_train, y_eval))

    assert y_train.shape == (N, Cout, H, W)
    ref_train = _reference(x, params, training=True)
    ref_eval = _reference(x, params, training=False)
    assert jnp.allclose(y_train, ref_train, atol=1e-3, rtol=1e-3), \
        float(jnp.max(jnp.abs(y_train - ref_train)))
    assert jnp.allclose(y_eval, ref_eval, atol=1e-3, rtol=1e-3), \
        float(jnp.max(jnp.abs(y_eval - ref_eval)))

    print("KERNEL_OK")
</pallas_src>

<mosaic_0001>
module attributes {stable_mosaic.version = 11 : i64} {
  func.func @kernel(%arg0: memref<512x128xf32, #tpu.memory_space<vmem>>, %arg1: memref<128x128xf32, #tpu.memory_space<vmem>>, %arg2: memref<2x128xf32, #tpu.memory_space<vmem>>, %arg3: memref<512x128xf32, #tpu.memory_space<vmem>>) attributes {dimension_semantics = [], scalar_prefetch = 0 : i64, scratch_operands = 0 : i64, tpu.core_type = #tpu.core_type<tc>} {
    %c0 = arith.constant 0 : index
    %c0_0 = arith.constant 0 : index
    %0 = vector.load %arg0[%c0, %c0_0] : memref<512x128xf32, #tpu.memory_space<vmem>>, vector<512x128xf32>
    %c0_1 = arith.constant 0 : index
    %c0_2 = arith.constant 0 : index
    %1 = vector.load %arg1[%c0_1, %c0_2] : memref<128x128xf32, #tpu.memory_space<vmem>>, vector<128x128xf32>
    %cst = arith.constant dense<0.000000e+00> : vector<512x128xf32>
    %2 = tpu.matmul %0, %1, %cst {dimension_numbers = #tpu.dot_dimension_numbers<[1], [0], [0], [1], [0, 0, 1, 1], [], []>} : vector<512x128xf32>, vector<128x128xf32>, vector<512x128xf32> -> vector<512x128xf32>
    %cst_3 = arith.constant dense<0.000000e+00> : vector<128xf32>
    %3 = vector.multi_reduction <add>, %2, %cst_3 [0] : vector<512x128xf32> to vector<128xf32>
    %4 = vector.shape_cast %3 : vector<128xf32> to vector<1x128xf32>
    %cst_4 = arith.constant 0.001953125 : f32
    %5 = vector.broadcast %cst_4 : f32 to vector<1x128xf32>
    %6 = arith.mulf %4, %5 : vector<1x128xf32>
    %7 = arith.mulf %2, %2 : vector<512x128xf32>
    %cst_5 = arith.constant dense<0.000000e+00> : vector<128xf32>
    %8 = vector.multi_reduction <add>, %7, %cst_5 [0] : vector<512x128xf32> to vector<128xf32>
    %9 = vector.shape_cast %8 : vector<128xf32> to vector<1x128xf32>
    %cst_6 = arith.constant 0.001953125 : f32
    %10 = vector.broadcast %cst_6 : f32 to vector<1x128xf32>
    %11 = arith.mulf %9, %10 : vector<1x128xf32>
    %12 = arith.mulf %6, %6 : vector<1x128xf32>
    %13 = arith.subf %11, %12 : vector<1x128xf32>
    %cst_7 = arith.constant 0.000000e+00 : f32
    %14 = vector.broadcast %cst_7 : f32 to vector<1x128xf32>
    %15 = arith.maximumf %13, %14 : vector<1x128xf32>
    %cst_8 = arith.constant 9.99999974E-6 : f32
    %16 = vector.broadcast %cst_8 : f32 to vector<1x128xf32>
    %17 = arith.addf %15, %16 : vector<1x128xf32>
    %18 = math.rsqrt %17 : vector<1x128xf32>
    %c0_9 = arith.constant 0 : index
    %c0_10 = arith.constant 0 : index
    %19 = vector.load %arg2[%c0_9, %c0_10] : memref<2x128xf32, #tpu.memory_space<vmem>>, vector<1x128xf32>
    %c1 = arith.constant 1 : index
    %c0_11 = arith.constant 0 : index
    %20 = vector.load %arg2[%c1, %c0_11] : memref<2x128xf32, #tpu.memory_space<vmem>>, vector<1x128xf32>
    %21 = arith.mulf %18, %19 : vector<1x128xf32>
    %22 = arith.mulf %6, %21 : vector<1x128xf32>
    %23 = arith.subf %20, %22 : vector<1x128xf32>
    %24 = vector.broadcast %21 : vector<1x128xf32> to vector<512x128xf32>
    %25 = arith.mulf %2, %24 : vector<512x128xf32>
    %26 = vector.broadcast %23 : vector<1x128xf32> to vector<512x128xf32>
    %27 = arith.addf %25, %26 : vector<512x128xf32>
    %c0_12 = arith.constant 0 : index
    %c0_13 = arith.constant 0 : index
    %28 = vector.load %arg3[%c0_12, %c0_13] : memref<512x128xf32, #tpu.memory_space<vmem>>, vector<512x128xf32>
    tpu.vector_store %arg3[%c0_12, %c0_13], %27 {strides = array<i32>} : memref<512x128xf32, #tpu.memory_space<vmem>>, vector<512x128xf32>,
    return
  }
}

</mosaic_0001>

<bundles_post_ra>
// kernel: linear_block_forward.1
= control target key start
LH: loop header
LB: loop body
LE: loop exit
PB: predicated region body
PF: predicated region fallthrough
CT: control target
= control target key end

     0   :  { %s2318_s1 = inlined_call_operand.vmem [shape: f32[128,128], index: 1, kind: input, shape index: {}]   ;;  %s2319_s0 = inlined_call_operand.vmem [shape: f32[512,128], index: 0, kind: input, shape index: {}]   ;;  %s2320_s2 = inlined_call_operand.vmem [shape: f32[2,128], index: 2, kind: input, shape index: {}]   ;;  %s2321_s3 = inlined_call_operand.vmem [shape: f32[512,128], index: 3, kind: output, shape index: {}]  }
   0x1   :  { %v93_v0 = vld [vmem:[%s2318_s1 + $0x78] sm:$0xff]  ;;  %v92_v1 = vld [vmem:[%s2318_s1 + $0x70] sm:$0xff]  ;;  %v91_v2 = vld [vmem:[%s2318_s1 + $0x68] sm:$0xff] }
   0x2   :  { %977 = vmatprep.subr.mxu0 %v93_v0  ;;  %1105 = vmatprep.subr.mxu1 %v93_v0  ;;  %v90_v3 = vld [vmem:[%s2318_s1 + $0x60] sm:$0xff]  ;;  %v89_v5 = vld [vmem:[%s2318_s1 + $0x58] sm:$0xff]  ;;  %v88_v6 = vld [vmem:[%s2318_s1 + $0x50] sm:$0xff] }
   0x3   :  { %978 = vmatpush3.msra.mxu0 %v93_v0  ;;  %1121 = vmatpush3.msra.mxu1 %v93_v0  ;;  %v14_v4 = vld [vmem:[%s2319_s0] sm:$0xff]  ;;  %v87_v7 = vld [vmem:[%s2318_s1 + $0x48] sm:$0xff]  ;;  %v85_v9 = vld [vmem:[%s2318_s1 + $0x38] sm:$0xff] }
   0x4   :  { %979 = vmatprep.subr.mxu0 %v92_v1  ;;  %1106 = vmatprep.subr.mxu1 %v92_v1  ;;  %v86_v8 = vld [vmem:[%s2318_s1 + $0x40] sm:$0xff]  ;;  %v84_v10 = vld [vmem:[%s2318_s1 + $0x30] sm:$0xff]  ;;  %v83_v11 = vld [vmem:[%s2318_s1 + $0x28] sm:$0xff] }
   0x5   :  { %980 = vmatpush3.msra.mxu0 %v92_v1  ;;  %1122 = vmatpush3.msra.mxu1 %v92_v1  ;;  %v82_v12 = vld [vmem:[%s2318_s1 + $0x20] sm:$0xff]  ;;  %v81_v13 = vld [vmem:[%s2318_s1 + $0x18] sm:$0xff]  ;;  %v80_v14 = vld [vmem:[%s2318_s1 + $0x10] sm:$0xff] }
   0x6   :  { %981 = vmatprep.subr.mxu0 %v91_v2  ;;  %1107 = vmatprep.subr.mxu1 %v91_v2  ;;  %v79_v15 = vld [vmem:[%s2318_s1 + $0x8] sm:$0xff]  ;;  %v78_v16 = vld [vmem:[%s2318_s1] sm:$0xff]  ;;  %v16_v18 = vld [vmem:[%s2319_s0 + $0x10] sm:$0xff] }
   0x7   :  { %982 = vmatpush3.msra.mxu0 %v91_v2  ;;  %1009 = vmatprep.mubr.f32.mxu0 %v14_v4  ;;  %v15_v17 = vld [vmem:[%s2319_s0 + $0x8] sm:$0xff]  ;;  %v46_v19 = vld [vmem:[%s2319_s0 + $0x100] sm:$0xff]  ;;  %v48_v21 = vld [vmem:[%s2319_s0 + $0x110] sm:$0xff] }
   0x8   :  { %983 = vmatprep.subr.mxu0 %v90_v3  ;;  %1123 = vmatpush3.msra.mxu1 %v91_v2  ;;  %v47_v20 = vld [vmem:[%s2319_s0 + $0x108] sm:$0xff]  ;;  %v17_v22 = vld [vmem:[%s2319_s0 + $0x18] sm:$0xff]  ;;  %v18_v23 = vld [vmem:[%s2319_s0 + $0x20] sm:$0xff] }
   0x9   :  { %984 = vmatpush3.msra.mxu0 %v90_v3  ;;  %1108 = vmatprep.subr.mxu1 %v90_v3  ;;  %v49_v24 = vld [vmem:[%s2319_s0 + $0x118] sm:$0xff]  ;;  %v50_v25 = vld [vmem:[%s2319_s0 + $0x120] sm:$0xff]  ;;  %v19_v26 = vld [vmem:[%s2319_s0 + $0x28] sm:$0xff] }
   0xa   :  { %985 = vmatprep.subr.mxu0 %v89_v5  ;;  %1124 = vmatpush3.msra.mxu1 %v90_v3  ;;  %v20_v27 = vld [vmem:[%s2319_s0 + $0x30] sm:$0xff]  ;;  %v51_v28 = vld [vmem:[%s2319_s0 + $0x128] sm:$0xff]  ;;  %v21_v30 = vld [vmem:[%s2319_s0 + $0x38] sm:$0xff] }
   0xb   :  { %986 = vmatpush3.msra.mxu0 %v89_v5  ;;  %1109 = vmatprep.subr.mxu1 %v89_v5  ;;  %v52_v29 = vld [vmem:[%s2319_s0 + $0x130] sm:$0xff]  ;;  %v22_v31 = vld [vmem:[%s2319_s0 + $0x40] sm:$0xff]  ;;  %v53_v32 = vld [vmem:[%s2319_s0 + $0x138] sm:$0xff] }
   0xc   :  { %987 = vmatprep.subr.mxu0 %v88_v6  ;;  %1125 = vmatpush3.msra.mxu1 %v89_v5  ;;  %v54_v33 = vld [vmem:[%s2319_s0 + $0x140] sm:$0xff]  ;;  %v23_v34 = vld [vmem:[%s2319_s0 + $0x48] sm:$0xff]  ;;  %v24_v35 = vld [vmem:[%s2319_s0 + $0x50] sm:$0xff] }
   0xd   :  { %988 = vmatpush3.msra.mxu0 %v88_v6  ;;  %1110 = vmatprep.subr.mxu1 %v88_v6  ;;  %v55_v36 = vld [vmem:[%s2319_s0 + $0x148] sm:$0xff]  ;;  %v56_v37 = vld [vmem:[%s2319_s0 + $0x150] sm:$0xff]  ;;  %v25_v38 = vld [vmem:[%s2319_s0 + $0x58] sm:$0xff] }
   0xe   :  { %989 = vmatprep.subr.mxu0 %v87_v7  ;;  %1126 = vmatpush3.msra.mxu1 %v88_v6  ;;  %v26_v39 = vld [vmem:[%s2319_s0 + $0x60] sm:$0xff]  ;;  %v57_v40 = vld [vmem:[%s2319_s0 + $0x158] sm:$0xff]  ;;  %v27_v42 = vld [vmem:[%s2319_s0 + $0x68] sm:$0xff] }
   0xf   :  { %990 = vmatpush3.msra.mxu0 %v87_v7  ;;  %1111 = vmatprep.subr.mxu1 %v87_v7  ;;  %v58_v41 = vld [vmem:[%s2319_s0 + $0x160] sm:$0xff]  ;;  %v28_v43 = vld [vmem:[%s2319_s0 + $0x70] sm:$0xff]  ;;  %v59_v44 = vld [vmem:[%s2319_s0 + $0x168] sm:$0xff] }
  0x10   :  { %991 = vmatprep.subr.mxu0 %v86_v8  ;;  %1127 = vmatpush3.msra.mxu1 %v87_v7  ;;  %v60_v45 = vld [vmem:[%s2319_s0 + $0x170] sm:$0xff]  ;;  %v29_v46 = vld [vmem:[%s2319_s0 + $0x78] sm:$0xff]  ;;  %v30_v47 = vld [vmem:[%s2319_s0 + $0x80] sm:$0xff] }
  0x11   :  { %992 = vmatpush3.msra.mxu0 %v86_v8  ;;  %1112 = vmatprep.subr.mxu1 %v86_v8  ;;  %v61_v48 = vld [vmem:[%s2319_s0 + $0x178] sm:$0xff]  ;;  %v62_v49 = vld [vmem:[%s2319_s0 + $0x180] sm:$0xff]  ;;  %v31_v50 = vld [vmem:[%s2319_s0 + $0x88] sm:$0xff] }
  0x12   :  { %993 = vmatprep.subr.mxu0 %v85_v9  ;;  %1128 = vmatpush3.msra.mxu1 %v86_v8  ;;  %v32_v51 = vld [vmem:[%s2319_s0 + $0x90] sm:$0xff]  ;;  %v63_v52 = vld [vmem:[%s2319_s0 + $0x188] sm:$0xff]  ;;  %v33_v54 = vld [vmem:[%s2319_s0 + $0x98] sm:$0xff] }
  0x13   :  { %994 = vmatpush3.msra.mxu0 %v85_v9  ;;  %1113 = vmatprep.subr.mxu1 %v85_v9  ;;  %v64_v53 = vld [vmem:[%s2319_s0 + $0x190] sm:$0xff]  ;;  %v34_v55 = vld [vmem:[%s2319_s0 + $0xa0] sm:$0xff]  ;;  %v65_v56 = vld [vmem:[%s2319_s0 + $0x198] sm:$0xff] }
  0x14   :  { %995 = vmatprep.subr.mxu0 %v84_v10  ;;  %1129 = vmatpush3.msra.mxu1 %v85_v9  ;;  %v66_v57 = vld [vmem:[%s2319_s0 + $0x1a0] sm:$0xff]  ;;  %v35_v58 = vld [vmem:[%s2319_s0 + $0xa8] sm:$0xff]  ;;  %v36_v59 = vld [vmem:[%s2319_s0 + $0xb0] sm:$0xff] }
  0x15   :  { %996 = vmatpush3.msra.mxu0 %v84_v10  ;;  %1114 = vmatprep.subr.mxu1 %v84_v10  ;;  %v67_v60 = vld [vmem:[%s2319_s0 + $0x1a8] sm:$0xff]  ;;  %v68_v61 = vld [vmem:[%s2319_s0 + $0x1b0] sm:$0xff]  ;;  %v37_v62 = vld [vmem:[%s2319_s0 + $0xb8] sm:$0xff] }
  0x16   :  { %997 = vmatprep.subr.mxu0 %v83_v11  ;;  %1130 = vmatpush3.msra.mxu1 %v84_v10  ;;  %v38_v63 = vld [vmem:[%s2319_s0 + $0xc0] sm:$0xff]  ;;  %v69_v0 = vld [vmem:[%s2319_s0 + $0x1b8] sm:$0xff]  ;;  %v39_v2 = vld [vmem:[%s2319_s0 + $0xc8] sm:$0xff] }
  0x17   :  { %998 = vmatpush3.msra.mxu0 %v83_v11  ;;  %1115 = vmatprep.subr.mxu1 %v83_v11  ;;  %v70_v1 = vld [vmem:[%s2319_s0 + $0x1c0] sm:$0xff]  ;;  %v40_v3 = vld [vmem:[%s2319_s0 + $0xd0] sm:$0xff]  ;;  %v71_v4 = vld [vmem:[%s2319_s0 + $0x1c8] sm:$0xff] }
  0x18   :  { %999 = vmatprep.subr.mxu0 %v82_v12  ;;  %1131 = vmatpush3.msra.mxu1 %v83_v11  ;;  %v72_v5 = vld [vmem:[%s2319_s0 + $0x1d0] sm:$0xff]  ;;  %v41_v6 = vld [vmem:[%s2319_s0 + $0xd8] sm:$0xff]  ;;  %v42_v7 = vld [vmem:[%s2319_s0 + $0xe0] sm:$0xff] }
  0x19   :  { %1000 = vmatpush3.msra.mxu0 %v82_v12  ;;  %1116 = vmatprep.subr.mxu1 %v82_v12  ;;  %v73_v8 = vld [vmem:[%s2319_s0 + $0x1d8] sm:$0xff]  ;;  %v74_v9 = vld [vmem:[%s2319_s0 + $0x1e0] sm:$0xff]  ;;  %v43_v10 = vld [vmem:[%s2319_s0 + $0xe8] sm:$0xff] }
  0x1a   :  { %1001 = vmatprep.subr.mxu0 %v81_v13  ;;  %1132 = vmatpush3.msra.mxu1 %v82_v12  ;;  %v44_v11 = vld [vmem:[%s2319_s0 + $0xf0] sm:$0xff]  ;;  %v75_v12 = vld [vmem:[%s2319_s0 + $0x1e8] sm:$0xff] }
  0x1b   :  { %1002 = vmatpush3.msra.mxu0 %v81_v13  ;;  %1117 = vmatprep.subr.mxu1 %v81_v13 }
  0x1c   :  { %1003 = vmatprep.subr.mxu0 %v80_v14  ;;  %1133 = vmatpush3.msra.mxu1 %v81_v13  ;;  %v76_v13 = vld [vmem:[%s2319_s0 + $0x1f0] sm:$0xff] }
  0x1d   :  { %1004 = vmatpush3.msra.mxu0 %v80_v14  ;;  %1118 = vmatprep.subr.mxu1 %v80_v14 }
  0x1e   :  { %1005 = vmatprep.subr.mxu0 %v79_v15  ;;  %1134 = vmatpush3.msra.mxu1 %v80_v14  ;;  %v45_v14 = vld [vmem:[%s2319_s0 + $0xf8] sm:$0xff] }
  0x1f   :  { %1006 = vmatpush3.msra.mxu0 %v79_v15  ;;  %1119 = vmatprep.subr.mxu1 %v79_v15 }
  0x20   :  { %1007 = vmatprep.subr.mxu0 %v78_v16  ;;  %1135 = vmatpush3.msra.mxu1 %v79_v15  ;;  %v77_v15 = vld [vmem:[%s2319_s0 + $0x1f8] sm:$0xff] }
  0x21   :  { %1008 = vmatpush3.msra.mxu0 %v78_v16  ;;  %1120 = vmatprep.subr.mxu1 %v78_v16 }
  0x22   :  { %1010 = vmatmul.mubr.f32.vlgmr.msra.gmra.mxu0 %v15_v17  ;;  %1136 = vmatpush3.msra.mxu1 %v78_v16 }
  0x23   :  { %1012 = vmatprep.mubr.f32.mxu0 %v16_v18  ;;  %1057 = vmatprep.mubr.f32.mxu1 %v46_v19 }
  0x24   :  { %1058 = vmatmul.mubr.f32.vlgmr.msra.gmra.mxu1 %v47_v20 }
  0x25   :  { %1060 = vmatprep.mubr.f32.mxu1 %v48_v21 }
  0x26   :  { %1013 = vmatmul.mubr.f32.gmra.mxu0 %v17_v22 }
  0x27   :  { %1015 = vmatprep.mubr.f32.mxu0 %v18_v23 }
  0x28   :  { %1061 = vmatmul.mubr.f32.gmra.mxu1 %v49_v24 }
  0x29   :  { %1063 = vmatprep.mubr.f32.mxu1 %v50_v25 }
  0x2a   :  { %1016 = vmatmul.mubr.f32.gmra.mxu0 %v19_v26 }
  0x2b   :  { %1018 = vmatprep.mubr.f32.mxu0 %v20_v27 }
  0x2c   :  { %1064 = vmatmul.mubr.f32.gmra.mxu1 %v51_v28 }
  0x2d   :  { %1066 = vmatprep.mubr.f32.mxu1 %v52_v29 }
  0x2e   :  { %1019 = vmatmul.mubr.f32.gmra.mxu0 %v21_v30 }
  0x2f   :  { %1021 = vmatprep.mubr.f32.mxu0 %v22_v31 }
  0x30   :  { %1067 = vmatmul.mubr.f32.gmra.mxu1 %v53_v32 }
  0x31   :  { %1069 = vmatprep.mubr.f32.mxu1 %v54_v33 }
  0x32   :  { %1022 = vmatmul.mubr.f32.gmra.mxu0 %v23_v34 }
  0x33   :  { %1024 = vmatprep.mubr.f32.mxu0 %v24_v35 }
  0x34   :  { %1070 = vmatmul.mubr.f32.gmra.mxu1 %v55_v36 }
  0x35   :  { %1072 = vmatprep.mubr.f32.mxu1 %v56_v37 }
  0x36   :  { %1025 = vmatmul.mubr.f32.gmra.mxu0 %v25_v38 }
  0x37   :  { %1027 = vmatprep.mubr.f32.mxu0 %v26_v39 }
  0x38   :  { %1073 = vmatmul.mubr.f32.gmra.mxu1 %v57_v40 }
  0x39   :  { %1075 = vmatprep.mubr.f32.mxu1 %v58_v41 }
  0x3a   :  { %1028 = vmatmul.mubr.f32.gmra.mxu0 %v27_v42 }
  0x3b   :  { %1030 = vmatprep.mubr.f32.mxu0 %v28_v43 }
  0x3c   :  { %1076 = vmatmul.mubr.f32.gmra.mxu1 %v59_v44 }
  0x3d   :  { %1078 = vmatprep.mubr.f32.mxu1 %v60_v45 }
  0x3e   :  { %1031 = vmatmul.mubr.f32.gmra.mxu0 %v29_v46 }
  0x3f   :  { %1033 = vmatprep.mubr.f32.mxu0 %v30_v47 }
  0x40   :  { %1079 = vmatmul.mubr.f32.gmra.mxu1 %v61_v48 }
  0x41   :  { %1081 = vmatprep.mubr.f32.mxu1 %v62_v49 }
  0x42   :  { %1034 = vmatmul.mubr.f32.gmra.mxu0 %v31_v50 }
  0x43   :  { %1036 = vmatprep.mubr.f32.mxu0 %v32_v51 }
  0x44   :  { %1082 = vmatmul.mubr.f32.gmra.mxu1 %v63_v52 }
  0x45   :  { %1084 = vmatprep.mubr.f32.mxu1 %v64_v53 }
  0x46   :  { %1037 = vmatmul.mubr.f32.gmra.mxu0 %v33_v54 }
  0x47   :  { %1039 = vmatprep.mubr.f32.mxu0 %v34_v55 }
  0x48   :  { %1085 = vmatmul.mubr.f32.gmra.mxu1 %v65_v56 }
  0x49   :  { %1087 = vmatprep.mubr.f32.mxu1 %v66_v57 }
  0x4a   :  { %1040 = vmatmul.mubr.f32.gmra.mxu0 %v35_v58 }
  0x4b   :  { %1042 = vmatprep.mubr.f32.mxu0 %v36_v59 }
  0x4c   :  { %1088 = vmatmul.mubr.f32.gmra.mxu1 %v67_v60 }
  0x4d   :  { %1090 = vmatprep.mubr.f32.mxu1 %v68_v61 }
  0x4e   :  { %1043 = vmatmul.mubr.f32.gmra.mxu0 %v37_v62 }
  0x4f   :  { %1045 = vmatprep.mubr.f32.mxu0 %v38_v63 }
  0x50   :  { %1091 = vmatmul.mubr.f32.gmra.mxu1 %v69_v0 }
  0x51   :  { %1093 = vmatprep.mubr.f32.mxu1 %v70_v1 }
  0x52   :  { %1046 = vmatmul.mubr.f32.gmra.mxu0 %v39_v2 }
  0x53   :  { %1048 = vmatprep.mubr.f32.mxu0 %v40_v3 }
  0x54   :  { %1094 = vmatmul.mubr.f32.gmra.mxu1 %v71_v4 }
  0x55   :  { %1096 = vmatprep.mubr.f32.mxu1 %v72_v5 }
  0x56   :  { %1049 = vmatmul.mubr.f32.gmra.mxu0 %v41_v6 }
  0x57   :  { %1051 = vmatprep.mubr.f32.mxu0 %v42_v7 }
  0x58   :  { %1097 = vmatmul.mubr.f32.gmra.mxu1 %v73_v8 }
  0x59   :  { %1099 = vmatprep.mubr.f32.mxu1 %v74_v9 }
  0x5a   :  { %1052 = vmatmul.mubr.f32.gmra.mxu0 %v43_v10 }
  0x5b   :  { %1054 = vmatprep.mubr.f32.mxu0 %v44_v11 }
  0x5c   :  { %1100 = vmatmul.mubr.f32.gmra.mxu1 %v75_v12 }
  0x5d   :  { %1102 = vmatprep.mubr.f32.mxu1 %v76_v13 }
  0x5e   :  { %1055 = vmatmul.mubr.f32.gmra.mxu0 %v45_v14 }
  0x60   :  { %1103 = vmatmul.mubr.f32.gmra.mxu1 %v77_v15 }
  0xe2   :  { %v1399_v16 = vpop.f32.mrf.mxu0 }
  0xe3   :  { %v550_v22 = vmul.f32 %v1399_v16, %v1399_v16 }
  0xe4   :  { %v1401_v17 = vpop.f32.mrf.mxu0  ;;  %v1403_v18 = vpop.f32.mrf.mxu1 }
  0xe5   :  { %v549_v19 = vmul.f32 %v1401_v17, %v1401_v17  ;;  %v479_v23 = vadd.f32 %v1399_v16, %v1401_v17 }
  0xe6   :  { %v1407_v20 = vpop.f32.mrf.mxu0  ;;  %v1409_v21 = vpop.f32.mrf.mxu1 }
  0xe7   :  { %v613_v25 = vadd.f32 %v550_v22, %v549_v19  ;;  %v552_v30 = vmul.f32 %v1407_v20, %v1407_v20 }
  0xe8   :  { %v1415_v24 = vpop.f32.mrf.mxu0  ;;  %v1422_v29 = vpop.f32.mrf.mxu1 }
  0xe9   :  { %v480_v26 = vadd.f32 %v479_v23, %v1415_v24  ;;  %v551_v27 = vmul.f32 %v1415_v24, %v1415_v24 }
  0xea   :  { %v1420_v28 = vpop.f32.mrf.mxu0  ;;  %v1434_v38 = vpop.f32.mrf.mxu1 }
  0xeb   :  { %v614_v31 = vadd.f32 %v613_v25, %v551_v27  ;;  %v481_v32 = vadd.f32 %v1407_v20, %v480_v26  ;;  %2347 = vst [vmem:[#allocation2_spill] sm:$0xff] %v1434_v38  ;;  %v554_v39 = vmul.f32 %v1420_v28, %v1420_v28 }
  0xec   :  { %v1427_v33 = vpop.f32.mrf.mxu0  ;;  %v1446_v47 = vpop.f32.mrf.mxu1 }
  0xed   :  { %v482_v34 = vadd.f32 %v481_v32, %v1427_v33  ;;  %v553_v35 = vmul.f32 %v1427_v33, %v1427_v33  ;;  %v615_v36 = vadd.f32 %v614_v31, %v552_v30 }
  0xee   :  { %v1432_v37 = vpop.f32.mrf.mxu0  ;;  %v1458_v56 = vpop.f32.mrf.mxu1 }
  0xef   :  { %v616_v40 = vadd.f32 %v615_v36, %v553_v35  ;;  %v483_v41 = vadd.f32 %v1420_v28, %v482_v34  ;;  %v556_v48 = vmul.f32 %v1432_v37, %v1432_v37  ;;  %2348 = vst [vmem:[#allocation3_spill] sm:$0xff] %v1458_v56 }
  0xf0   :  { %v1439_v42 = vpop.f32.mrf.mxu0  ;;  %v1470_v1 = vpop.f32.mrf.mxu1 }
  0xf1   :  { %v484_v43 = vadd.f32 %v483_v41, %v1439_v42  ;;  %v555_v44 = vmul.f32 %v1439_v42, %v1439_v42  ;;  %v617_v45 = vadd.f32 %v616_v40, %v554_v39 }
  0xf2   :  { %v1444_v46 = vpop.f32.mrf.mxu0  ;;  %v1482_v10 = vpop.f32.mrf.mxu1 }
  0xf3   :  { %v618_v49 = vadd.f32 %v617_v45, %v555_v44  ;;  %v485_v50 = vadd.f32 %v1432_v37, %v484_v43  ;;  %v558_v57 = vmul.f32 %v1444_v46, %v1444_v46  ;;  %2349 = vst [vmem:[#allocation4_spill] sm:$0xff] %v1482_v10 }
  0xf4   :  { %v1451_v51 = vpop.f32.mrf.mxu0  ;;  %v1494_v25 = vpop.f32.mrf.mxu1 }
  0xf5   :  { %v486_v52 = vadd.f32 %v485_v50, %v1451_v51  ;;  %v557_v53 = vmul.f32 %v1451_v51, %v1451_v51  ;;  %v619_v54 = vadd.f32 %v618_v49, %v556_v48 }
  0xf6   :  { %v1456_v55 = vpop.f32.mrf.mxu0  ;;  %v1506_v39 = vpop.f32.mrf.mxu1 }
  0xf7   :  { %v620_v58 = vadd.f32 %v619_v54, %v557_v53  ;;  %v487_v59 = vadd.f32 %v1444_v46, %v486_v52  ;;  %v560_v2 = vmul.f32 %v1456_v55, %v1456_v55  ;;  %2350 = vst [vmem:[#allocation5_spill] sm:$0xff] %v1506_v39 }
  0xf8   :  { %v1463_v60 = vpop.f32.mrf.mxu0  ;;  %v1518_v52 = vpop.f32.mrf.mxu1 }
  0xf9   :  { %v488_v61 = vadd.f32 %v487_v59, %v1463_v60  ;;  %v559_v62 = vmul.f32 %v1463_v60, %v1463_v60  ;;  %v621_v63 = vadd.f32 %v620_v58, %v558_v57 }
  0xfa   :  { %v1468_v0 = vpop.f32.mrf.mxu0 }
  0xfb   :  { %v622_v3 = vadd.f32 %v621_v63, %v559_v62  ;;  %v489_v4 = vadd.f32 %v1456_v55, %v488_v61  ;;  %v562_v11 = vmul.f32 %v1468_v0, %v1468_v0 }
  0xfc   :  { %v1475_v5 = vpop.f32.mrf.mxu0 }
  0xfd   :  { %v490_v6 = vadd.f32 %v489_v4, %v1475_v5  ;;  %v561_v7 = vmul.f32 %v1475_v5, %v1475_v5  ;;  %v623_v8 = vadd.f32 %v622_v3, %v560_v2  ;;  %v1530_v2 = vpop.f32.mrf.mxu1 }
  0xfe   :  { %v1480_v9 = vpop.f32.mrf.mxu0  ;;  %2351 = vst [vmem:[#allocation6_spill] sm:$0xff] %v1530_v2 }
  0xff   :  { %v624_v12 = vadd.f32 %v623_v8, %v561_v7  ;;  %v491_v13 = vadd.f32 %v1468_v0, %v490_v6  ;;  %v564_v26 = vmul.f32 %v1480_v9, %v1480_v9 }
 0x100   :  { %v1487_v14 = vpop.f32.mrf.mxu0 }
 0x101   :  { %v492_v15 = vadd.f32 %v491_v13, %v1487_v14  ;;  %v563_v19 = vmul.f32 %v1487_v14, %v1487_v14  ;;  %v625_v22 = vadd.f32 %v624_v12, %v562_v11 }
 0x102   :  { %v1492_v23 = vpop.f32.mrf.mxu0 }
 0x103   :  { %v626_v27 = vadd.f32 %v625_v22, %v563_v19  ;;  %v493_v30 = vadd.f32 %v1480_v9, %v492_v15  ;;  %v566_v40 = vmul.f32 %v1492_v23, %v1492_v23  ;;  %v1542_v15 = vpop.f32.mrf.mxu1 }
 0x104   :  { %v1499_v31 = vpop.f32.mrf.mxu0  ;;  %2352 = vst [vmem:[#allocation7_spill] sm:$0xff] %v1542_v15 }
 0x105   :  { %v494_v32 = vadd.f32 %v493_v30, %v1499_v31  ;;  %v565_v34 = vmul.f32 %v1499_v31, %v1499_v31  ;;  %v627_v35 = vadd.f32 %v626_v27, %v564_v26 }
 0x106   :  { %v1504_v36 = vpop.f32.mrf.mxu0 }
 0x107   :  { %v628_v41 = vadd.f32 %v627_v35, %v565_v34  ;;  %v495_v43 = vadd.f32 %v1492_v23, %v494_v32  ;;  %v568_v53 = vmul.f32 %v1504_v36, %v1504_v36 }
 0x108   :  { %v1511_v44 = vpop.f32.mrf.mxu0 }
 0x109   :  { %v496_v45 = vadd.f32 %v495_v43, %v1511_v44  ;;  %v567_v48 = vmul.f32 %v1511_v44, %v1511_v44  ;;  %v629_v49 = vadd.f32 %v628_v41, %v566_v40  ;;  %v1554_v40 = vpop.f32.mrf.mxu1 }
 0x10a   :  { %v1516_v50 = vpop.f32.mrf.mxu0  ;;  %2353 = vst [vmem:[#allocation8_spill] sm:$0xff] %v1554_v40 }
 0x10b   :  { %v630_v54 = vadd.f32 %v629_v49, %v567_v48  ;;  %v497_v57 = vadd.f32 %v1504_v36, %v496_v45  ;;  %v570_v3 = vmul.f32 %v1516_v50, %v1516_v50 }
 0x10c   :  { %v1523_v58 = vpop.f32.mrf.mxu0 }
 0x10d   :  { %v498_v59 = vadd.f32 %v497_v57, %v1523_v58  ;;  %v569_v61 = vmul.f32 %v1523_v58, %v1523_v58  ;;  %v631_v62 = vadd.f32 %v630_v54, %v568_v53 }
 0x10e   :  { %v1528_v63 = vpop.f32.mrf.mxu0 }
 0x10f   :  { %v632_v4 = vadd.f32 %v631_v62, %v569_v61  ;;  %v499_v6 = vadd.f32 %v1516_v50, %v498_v59  ;;  %v572_v19 = vmul.f32 %v1528_v63, %v1528_v63  ;;  %v1566_v59 = vpop.f32.mrf.mxu1 }
 0x110   :  { %v1535_v7 = vpop.f32.mrf.mxu0  ;;  %2354 = vst [vmem:[#allocation9_spill] sm:$0xff] %v1566_v59 }
 0x111   :  { %v500_v8 = vadd.f32 %v499_v6, %v1535_v7  ;;  %v571_v11 = vmul.f32 %v1535_v7, %v1535_v7  ;;  %v633_v12 = vadd.f32 %v632_v4, %v570_v3 }
 0x112   :  { %v1540_v13 = vpop.f32.mrf.mxu0 }
 0x113   :  { %v634_v22 = vadd.f32 %v633_v12, %v571_v11  ;;  %v501_v26 = vadd.f32 %v1528_v63, %v500_v8  ;;  %v574_v41 = vmul.f32 %v1540_v13, %v1540_v13 }
 0x114   :  { %v1547_v27 = vpop.f32.mrf.mxu0 }
 0x115   :  { %v502_v30 = vadd.f32 %v501_v26, %v1547_v27  ;;  %v573_v32 = vmul.f32 %v1547_v27, %v1547_v27  ;;  %v635_v34 = vadd.f32 %v634_v22, %v572_v19  ;;  %v1578_v19 = vpop.f32.mrf.mxu1 }
 0x116   :  { %v1552_v35 = vpop.f32.mrf.mxu0  ;;  %2355 = vst [vmem:[#allocation10_spill] sm:$0xff] %v1578_v19 }
 0x117   :  { %v636_v43 = vadd.f32 %v635_v34, %v573_v32  ;;  %v503_v45 = vadd.f32 %v1540_v13, %v502_v30  ;;  %v576_v61 = vmul.f32 %v1552_v35, %v1552_v35 }
 0x118   :  { %v1559_v48 = vpop.f32.mrf.mxu0 }
 0x119   :  { %v504_v49 = vadd.f32 %v503_v45, %v1559_v48  ;;  %v575_v53 = vmul.f32 %v1559_v48, %v1559_v48  ;;  %v637_v54 = vadd.f32 %v636_v43, %v574_v41  ;;  %v1588_v45 = vpop.f32.mrf.mxu1 }
 0x11a   :  { %v1564_v57 = vpop.f32.mrf.mxu0  ;;  %2356 = vst [vmem:[#allocation11_spill] sm:$0xff] %v1588_v45 }
 0x11b   :  { %v638_v62 = vadd.f32 %v637_v54, %v575_v53  ;;  %v505_v3 = vadd.f32 %v1552_v35, %v504_v49  ;;  %v578_v22 = vmul.f32 %v1564_v57, %v1564_v57 }
 0x11c   :  { %v1571_v4 = vpop.f32.mrf.mxu0 }
 0x11d   :  { %v506_v6 = vadd.f32 %v505_v3, %v1571_v4  ;;  %v577_v8 = vmul.f32 %v1571_v4, %v1571_v4  ;;  %v639_v11 = vadd.f32 %v638_v62, %v576_v61  ;;  %v581_v3 = vmul.f32 %v1409_v21, %v1409_v21 }
 0x11e   :  { %v1576_v12 = vpop.f32.mrf.mxu0 }
 0x11f   :  { %v640_v26 = vadd.f32 %v639_v11, %v577_v8  ;;  %v507_v30 = vadd.f32 %v1564_v57, %v506_v6  ;;  %v580_v49 = vmul.f32 %v1576_v12, %v1576_v12  ;;  %v1596_v6 = vpop.f32.mrf.mxu1  ;;  %v582_v8 = vmul.f32 %v1403_v18, %v1403_v18 }
 0x120   :  { %v1583_v32 = vpop.f32.mrf.mxu0  ;;  %2357 = vst [vmem:[#allocation12_spill] sm:$0xff] %v1596_v6 }
 0x121   :  { %v508_v34 = vadd.f32 %v507_v30, %v1583_v32  ;;  %v579_v41 = vmul.f32 %v1583_v32, %v1583_v32  ;;  %v641_v43 = vadd.f32 %v640_v26, %v578_v22  ;;  %v583_v30 = vmul.f32 %v1434_v38, %v1434_v38 }
 0x123   :  { %v509_v53 = vadd.f32 %v1576_v12, %v508_v34  ;;  %v642_v54 = vadd.f32 %v641_v43, %v579_v41  ;;  %v1604_v41 = vpop.f32.mrf.mxu1  ;;  %v584_v43 = vmul.f32 %v1422_v29, %v1422_v29 }
 0x124   :  { %2358 = vst [vmem:[#allocation13_spill] sm:$0xff] %v1604_v41 }
 0x125   :  { %v643_v61 = vadd.f32 %v642_v54, %v580_v49  ;;  %v510_v62 = vadd.f32 %v509_v53, %v1409_v21 }
 0x127   :  { %v644_v11 = vadd.f32 %v643_v61, %v581_v3  ;;  %v511_v22 = vadd.f32 %v1403_v18, %v510_v62  ;;  %v585_v61 = vmul.f32 %v1458_v56, %v1458_v56  ;;  %v1612_v3 = vpop.f32.mrf.mxu1 }
 0x128   :  { %2359 = vst [vmem:[#allocation14_spill] sm:$0xff] %v1612_v3 }
 0x129   :  { %v512_v26 = vadd.f32 %v511_v22, %v1434_v38  ;;  %v645_v34 = vadd.f32 %v644_v11, %v582_v8  ;;  %v586_v22 = vmul.f32 %v1446_v47, %v1446_v47 }
 0x12b   :  { %v646_v49 = vadd.f32 %v645_v34, %v583_v30  ;;  %v513_v53 = vadd.f32 %v1422_v29, %v512_v26  ;;  %v587_v30 = vmul.f32 %v1482_v10, %v1482_v10  ;;  %v1620_v34 = vpop.f32.mrf.mxu1 }
 0x12c   :  { %2360 = vst [vmem:[#allocation15_spill] sm:$0xff] %v1620_v34 }
 0x12d   :  { %v514_v54 = vadd.f32 %v513_v53, %v1458_v56  ;;  %v647_v62 = vadd.f32 %v646_v49, %v584_v43  ;;  %v588_v53 = vmul.f32 %v1470_v1, %v1470_v1 }
 0x12f   :  { %v648_v8 = vadd.f32 %v647_v62, %v585_v61  ;;  %v515_v11 = vadd.f32 %v1446_v47, %v514_v54  ;;  %v589_v61 = vmul.f32 %v1506_v39, %v1506_v39  ;;  %v1628_v62 = vpop.f32.mrf.mxu1 }
 0x130   :  { %2361 = vst [vmem:[#allocation16_spill] sm:$0xff] %v1628_v62 }
 0x131   :  { %v516_v38 = vadd.f32 %v515_v11, %v1482_v10  ;;  %v649_v26 = vadd.f32 %v648_v8, %v586_v22  ;;  %v590_v11 = vmul.f32 %v1494_v25, %v1494_v25 }
 0x133   :  { %v650_v43 = vadd.f32 %v649_v26, %v587_v30  ;;  %v517_v49 = vadd.f32 %v1470_v1, %v516_v38  ;;  %v591_v30 = vmul.f32 %v1530_v2, %v1530_v2  ;;  %v1636_v26 = vpop.f32.mrf.mxu1 }
 0x134   :  { %2362 = vst [vmem:[#allocation17_spill] sm:$0xff] %v1636_v26 }
 0x135   :  { %v518_v56 = vadd.f32 %v517_v49, %v1506_v39  ;;  %v651_v54 = vadd.f32 %v650_v43, %v588_v53  ;;  %v592_v49 = vmul.f32 %v1518_v52, %v1518_v52 }
 0x137   :  { %v652_v22 = vadd.f32 %v651_v54, %v589_v61  ;;  %v519_v8 = vadd.f32 %v1494_v25, %v518_v56  ;;  %v593_v61 = vmul.f32 %v1554_v40, %v1554_v40  ;;  %v1644_v54 = vpop.f32.mrf.mxu1 }
 0x138   :  { %2363 = vst [vmem:[#allocation18_spill] sm:$0xff] %v1644_v54 }
 0x139   :  { %v520_v10 = vadd.f32 %v519_v8, %v1530_v2  ;;  %v653_v38 = vadd.f32 %v652_v22, %v590_v11  ;;  %v594_v8 = vmul.f32 %v1542_v15, %v1542_v15 }
 0x13b   :  { %v654_v53 = vadd.f32 %v653_v38, %v591_v30  ;;  %v521_v43 = vadd.f32 %v1518_v52, %v520_v10  ;;  %v595_v30 = vmul.f32 %v1578_v19, %v1578_v19  ;;  %v1652_v38 = vpop.f32.mrf.mxu1 }
 0x13c   :  { %2364 = vst [vmem:[#allocation19_spill] sm:$0xff] %v1652_v38 }
 0x13d   :  { %v522_v39 = vadd.f32 %v521_v43, %v1554_v40  ;;  %v655_v56 = vadd.f32 %v654_v53, %v592_v49  ;;  %v596_v43 = vmul.f32 %v1566_v59, %v1566_v59 }
 0x13f   :  { %v656_v11 = vadd.f32 %v655_v56, %v593_v61  ;;  %v523_v22 = vadd.f32 %v1542_v15, %v522_v39  ;;  %v597_v61 = vmul.f32 %v1596_v6, %v1596_v6  ;;  %v1660_v56 = vpop.f32.mrf.mxu1 }
 0x140   :  { %2365 = vst [vmem:[#allocation20_spill] sm:$0xff] %v1660_v56 }
 0x141   :  { %v524_v2 = vadd.f32 %v523_v22, %v1578_v19  ;;  %v657_v10 = vadd.f32 %v656_v11, %v594_v8  ;;  %v598_v22 = vmul.f32 %v1588_v45, %v1588_v45 }
 0x143   :  { %v658_v49 = vadd.f32 %v657_v10, %v595_v30  ;;  %v525_v53 = vadd.f32 %v1566_v59, %v524_v2  ;;  %v599_v30 = vmul.f32 %v1612_v3, %v1612_v3  ;;  %v1668_v10 = vpop.f32.mrf.mxu1 }
 0x144   :  { %2366 = vst [vmem:[#allocation21_spill] sm:$0xff] %v1668_v10 }
 0x145   :  { %v526_v40 = vadd.f32 %v525_v53, %v1596_v6  ;;  %v659_v39 = vadd.f32 %v658_v49, %v596_v43  ;;  %v600_v53 = vmul.f32 %v1604_v41, %v1604_v41 }
 0x147   :  { %v660_v8 = vadd.f32 %v659_v39, %v597_v61  ;;  %v527_v11 = vadd.f32 %v1588_v45, %v526_v40  ;;  %v601_v61 = vmul.f32 %v1628_v62, %v1628_v62  ;;  %v1676_v39 = vpop.f32.mrf.mxu1 }
 0x148   :  { %2367 = vst [vmem:[#allocation22_spill] sm:$0xff] %v1676_v39 }
 0x149   :  { %v528_v19 = vadd.f32 %v527_v11, %v1612_v3  ;;  %v661_v2 = vadd.f32 %v660_v8, %v598_v22  ;;  %v602_v11 = vmul.f32 %v1620_v34, %v1620_v34 }
 0x14b   :  { %v662_v43 = vadd.f32 %v661_v2, %v599_v30  ;;  %v529_v49 = vadd.f32 %v1604_v41, %v528_v19  ;;  %v603_v30 = vmul.f32 %v1644_v54, %v1644_v54  ;;  %v1684_v2 = vpop.f32.mrf.mxu1 }
 0x14c   :  { %2368 = vst [vmem:[#allocation23_spill] sm:$0xff] %v1684_v2 }
 0x14d   :  { %v530_v6 = vadd.f32 %v529_v49, %v1628_v62  ;;  %v663_v40 = vadd.f32 %v662_v43, %v600_v53  ;;  %v604_v49 = vmul.f32 %v1636_v26, %v1636_v26 }
 0x14f   :  { %v664_v22 = vadd.f32 %v663_v40, %v601_v61  ;;  %v531_v8 = vadd.f32 %v1620_v34, %v530_v6  ;;  %v605_v61 = vmul.f32 %v1660_v56, %v1660_v56  ;;  %v1692_v40 = vpop.f32.mrf.mxu1 }
 0x150   :  { %2369 = vst [vmem:[#allocation24_spill] sm:$0xff] %v1692_v40 }
 0x151   :  { %v532_v3 = vadd.f32 %v531_v8, %v1644_v54  ;;  %v665_v19 = vadd.f32 %v664_v22, %v602_v11  ;;  %v606_v8 = vmul.f32 %v1652_v38, %v1652_v38 }
 0x153   :  { %v666_v53 = vadd.f32 %v665_v19, %v603_v30  ;;  %v533_v43 = vadd.f32 %v1636_v26, %v532_v3  ;;  %v607_v30 = vmul.f32 %v1676_v39, %v1676_v39  ;;  %v1700_v19 = vpop.f32.mrf.mxu1 }
 0x155   :  { %v534_v62 = vadd.f32 %v533_v43, %v1660_v56  ;;  %v667_v6 = vadd.f32 %v666_v53, %v604_v49  ;;  %v608_v43 = vmul.f32 %v1668_v10, %v1668_v10 }
 0x157   :  { %v668_v11 = vadd.f32 %v667_v6, %v605_v61  ;;  %v535_v22 = vadd.f32 %v1652_v38, %v534_v62  ;;  %v609_v61 = vmul.f32 %v1692_v40, %v1692_v40  ;;  %v1708_v6 = vpop.f32.mrf.mxu1 }
 0x158   :  { %2370 = vst [vmem:[#allocation25_spill] sm:$0xff] %v1708_v6 }
 0x159   :  { %v536_v54 = vadd.f32 %v535_v22, %v1676_v39  ;;  %v669_v3 = vadd.f32 %v668_v11, %v606_v8  ;;  %v610_v22 = vmul.f32 %v1684_v2, %v1684_v2 }
 0x15b   :  { %v670_v49 = vadd.f32 %v669_v3, %v607_v30  ;;  %v537_v53 = vadd.f32 %v1668_v10, %v536_v54  ;;  %v611_v30 = vmul.f32 %v1708_v6, %v1708_v6  ;;  %v612_v3 = vmul.f32 %v1700_v19, %v1700_v19 }
 0x15d   :  { %v538_v56 = vadd.f32 %v537_v53, %v1692_v40  ;;  %v671_v62 = vadd.f32 %v670_v49, %v608_v43 }
 0x15f   :  { %v672_v8 = vadd.f32 %v671_v62, %v609_v61  ;;  %v539_v11 = vadd.f32 %v1684_v2, %v538_v56 }
 0x161   :  { %v540_v39 = vadd.f32 %v539_v11, %v1708_v6  ;;  %v673_v54 = vadd.f32 %v672_v8, %v610_v22 }
 0x163   :  { %v541_v53 = vadd.f32 %v1700_v19, %v540_v39  ;;  %v674_v43 = vadd.f32 %v673_v54, %v611_v30  ;;  %v693_v30 = vlaneseq }
 0x165   :  { %v542_v49 = vrot.slane %v541_v53, 4  ;;  %v675_v40 = vadd.f32 %v674_v43, %v612_v3  ;;  %v1719_v54 = vshrl.u32 %v693_v30, 7  ;;  %v2371_v43 = vld [vmem:[#allocation2_spill] sm:$0xff]  ;;  %v2377_v30 = vld [vmem:[#allocation7_spill] sm:$0xff] }
 0x167   :  { %v543_v10 = vadd.f32 %v542_v49, %v541_v53  ;;  %v676_v38 = vrot.slane %v675_v40, 4  ;;  %v2372_v49 = vld [vmem:[#allocation3_spill] sm:$0xff] }
 0x169   :  { %v544_v26 = vrot.slane %v543_v10, 2  ;;  %v677_v61 = vadd.f32 %v676_v38, %v675_v40  ;;  %v2346_v38 = vsub.s32 0, %v1719_v54 }
 0x16b   :  { %v545_v62 = vadd.f32 %v544_v26, %v543_v10  ;;  %v678_v56 = vrot.slane %v677_v61, 2  ;;  %v688_v26 = vld [vmem:[%s2320_s2] sm:$0x1] }
 0x16d   :  { %v546_v2 = vrot.slane %v545_v62, 1  ;;  %v679_v11 = vadd.f32 %v678_v56, %v677_v61  ;;  %v2373_v61 = vld [vmem:[#allocation4_spill] sm:$0xff]  ;;  %v2374_v56 = vld [vmem:[#allocation5_spill] sm:$0xff] }
 0x16f   :  { %v547_v34 = vadd.f32 %v546_v2, %v545_v62  ;;  %v680_v41 = vrot.slane %v679_v11, 1 }
 0x171   :  { %v548_v6 = vmul.f32 0.001953125, %v547_v34  ;;  %v681_v22 = vadd.f32 %v680_v41, %v679_v11  ;;  %v1728_v41 = vld [vmem:[%s2320_s2 + $0x1] sm:$0x1] }
 0x173   :  { %v682_v8 = vmul.f32 0.001953125, %v681_v22  ;;  %v683_v45 = vmul.f32 %v548_v6, %v548_v6  ;;  %v2375_v22 = vld [vmem:[#allocation6_spill] sm:$0xff] }
 0x175   :  { %v684_v59 = vsub.f32 %v682_v8, %v683_v45 }
 0x177   :  { %v685_v15 = vmax.f32 %v684_v59, 0.0 }
 0x179   :  { %v686_v39 = vadd.f32 1e-05, %v685_v15 }
 0x17b   :  { %1137 = vrsqrt.f32 %v686_v39  ;;  %v2376_v39 = vld [vmem:[#allocation8_spill] sm:$0xff] }
 0x188   :  { %v1138_v10 = vpop.eup %1137 }
 0x189   :  { %v690_v2 = vmul.f32 %v1138_v10, %v688_v26  ;;  %v2378_v10 = vld [vmem:[#allocation10_spill] sm:$0xff] }
 0x18b   :  { %v1730_v45 = vmul.f32 %v690_v2, %v548_v6  ;;  %v1734_v15 = vrot.slane %v690_v2, %v2346_v38  ;;  %v2379_v2 = vld [vmem:[#allocation9_spill] sm:$0xff]  ;;  %v2391_v38 = vld [vmem:[#allocation18_spill] sm:$0xff] }
 0x18d   :  { %v692_v59 = vsub.f32 %v1728_v41, %v1730_v45  ;;  %v1740_v34 = vmul.f32 %v1734_v15, %v1401_v17  ;;  %v1744_v40 = vmul.f32 %v1399_v16, %v1734_v15  ;;  %v1748_v3 = vmul.f32 %v1734_v15, %v1415_v24  ;;  %v2380_v45 = vld [vmem:[#allocation12_spill] sm:$0xff] }
 0x18e   :  { %v1752_v6 = vmul.f32 %v1407_v20, %v1734_v15  ;;  %v1756_v53 = vmul.f32 %v1734_v15, %v1427_v33  ;;  %v1760_v17 = vmul.f32 %v1420_v28, %v1734_v15  ;;  %v1764_v16 = vmul.f32 %v1734_v15, %v1439_v42 }
 0x18f   :  { %v1768_v24 = vmul.f32 %v1432_v37, %v1734_v15  ;;  %v1772_v20 = vmul.f32 %v1734_v15, %v1451_v51  ;;  %v1776_v33 = vmul.f32 %v1444_v46, %v1734_v15  ;;  %v1780_v28 = vmul.f32 %v1734_v15, %v1463_v60 }
 0x190   :  { %v1784_v42 = vmul.f32 %v1456_v55, %v1734_v15  ;;  %v1788_v37 = vmul.f32 %v1734_v15, %v1475_v5  ;;  %v1792_v51 = vmul.f32 %v1468_v0, %v1734_v15  ;;  %v1796_v46 = vmul.f32 %v1734_v15, %v1487_v14 }
 0x191   :  { %v1800_v60 = vmul.f32 %v1480_v9, %v1734_v15  ;;  %v1804_v55 = vmul.f32 %v1734_v15, %v1499_v31  ;;  %v1808_v5 = vmul.f32 %v1492_v23, %v1734_v15  ;;  %v1812_v0 = vmul.f32 %v1734_v15, %v1511_v44 }
 0x192   :  { %v1816_v14 = vmul.f32 %v1504_v36, %v1734_v15  ;;  %v1820_v9 = vmul.f32 %v1734_v15, %v1523_v58  ;;  %v1824_v31 = vmul.f32 %v1516_v50, %v1734_v15  ;;  %v1828_v23 = vmul.f32 %v1734_v15, %v1535_v7 }
 0x193   :  { %v1832_v44 = vmul.f32 %v1528_v63, %v1734_v15  ;;  %v1836_v36 = vmul.f32 %v1734_v15, %v1547_v27  ;;  %v1840_v58 = vmul.f32 %v1540_v13, %v1734_v15  ;;  %v1844_v50 = vmul.f32 %v1734_v15, %v1559_v48 }
 0x194   :  { %v1848_v7 = vmul.f32 %v1552_v35, %v1734_v15  ;;  %v1852_v63 = vmul.f32 %v1734_v15, %v1571_v4  ;;  %v1856_v27 = vmul.f32 %v1564_v57, %v1734_v15  ;;  %v1860_v13 = vmul.f32 %v1734_v15, %v1583_v32 }
 0x195   :  { %v1864_v48 = vmul.f32 %v1576_v12, %v1734_v15  ;;  %v1868_v35 = vmul.f32 %v1734_v15, %v1409_v21  ;;  %v1872_v4 = vmul.f32 %v1403_v18, %v1734_v15  ;;  %v1876_v57 = vmul.f32 %v1734_v15, %v2371_v43  ;;  %v2381_v43 = vld [vmem:[#allocation11_spill] sm:$0xff] }
 0x196   :  { %v1880_v32 = vmul.f32 %v1422_v29, %v1734_v15  ;;  %v1884_v12 = vmul.f32 %v1734_v15, %v2372_v49  ;;  %v1888_v21 = vmul.f32 %v1446_v47, %v1734_v15  ;;  %v1892_v18 = vmul.f32 %v1734_v15, %v2373_v61  ;;  %v2383_v61 = vld [vmem:[#allocation14_spill] sm:$0xff] }
 0x197   :  { %v1896_v62 = vmul.f32 %v1470_v1, %v1734_v15  ;;  %v1900_v29 = vmul.f32 %v1734_v15, %v2374_v56  ;;  %v1904_v11 = vmul.f32 %v1494_v25, %v1734_v15  ;;  %v1908_v47 = vmul.f32 %v1734_v15, %v2375_v22  ;;  %v2385_v22 = vld [vmem:[#allocation13_spill] sm:$0xff] }
 0x198   :  { %v1912_v8 = vmul.f32 %v1518_v52, %v1734_v15  ;;  %v1916_v1 = vmul.f32 %v1734_v15, %v2376_v39  ;;  %v1920_v26 = vmul.f32 %v2377_v30, %v1734_v15  ;;  %v1924_v25 = vmul.f32 %v1734_v15, %v2378_v10  ;;  %v2387_v30 = vld [vmem:[#allocation16_spill] sm:$0xff] }
 0x199   :  { %v1928_v41 = vmul.f32 %v2379_v2, %v1734_v15  ;;  %v1932_v52 = vmul.f32 %v1734_v15, %v2380_v45  ;;  %v1936_v49 = vmul.f32 %v2381_v43, %v1734_v15  ;;  %v1940_v56 = vmul.f32 %v1734_v15, %v2383_v61  ;;  %v2389_v2 = vld [vmem:[#allocation15_spill] sm:$0xff] }
 0x19a   :  { %v1944_v39 = vmul.f32 %v2385_v22, %v1734_v15  ;;  %v1948_v10 = vmul.f32 %v1734_v15, %v2387_v30  ;;  %v1952_v45 = vmul.f32 %v2389_v2, %v1734_v15  ;;  %v1956_v43 = vmul.f32 %v1734_v15, %v2391_v38 }
 0x19b   :  { %2382 = vst [vmem:[#allocation2_spill] sm:$0xff] %v1936_v49  ;;  %2384 = vst [vmem:[#allocation3_spill] sm:$0xff] %v1940_v56  ;;  %v2393_v49 = vld [vmem:[#allocation17_spill] sm:$0xff]  ;;  %v2395_v56 = vld [vmem:[#allocation20_spill] sm:$0xff] }
 0x19c   :  { %2386 = vst [vmem:[#allocation4_spill] sm:$0xff] %v1944_v39  ;;  %2388 = vst [vmem:[#allocation5_spill] sm:$0xff] %v1948_v10  ;;  %v1960_v61 = vmul.f32 %v2393_v49, %v1734_v15  ;;  %v1964_v22 = vmul.f32 %v1734_v15, %v2395_v56  ;;  %v2397_v39 = vld [vmem:[#allocation19_spill] sm:$0xff]  ;;  %v2399_v10 = vld [vmem:[#allocation22_spill] sm:$0xff] }
 0x19d   :  { %2390 = vst [vmem:[#allocation6_spill] sm:$0xff] %v1952_v45  ;;  %2392 = vst [vmem:[#allocation8_spill] sm:$0xff] %v1956_v43  ;;  %v1968_v30 = vmul.f32 %v2397_v39, %v1734_v15  ;;  %v1972_v2 = vmul.f32 %v1734_v15, %v2399_v10  ;;  %v2400_v45 = vld [vmem:[#allocation21_spill] sm:$0xff]  ;;  %v2401_v43 = vsub.s32 0, %v1719_v54 }
 0x19e   :  { %2394 = vst [vmem:[#allocation7_spill] sm:$0xff] %v1960_v61  ;;  %2396 = vst [vmem:[#allocation10_spill] sm:$0xff] %v1964_v22  ;;  %v1976_v38 = vmul.f32 %v2400_v45, %v1734_v15  ;;  %v2402_v61 = vld [vmem:[#allocation24_spill] sm:$0xff]  ;;  %v2403_v22 = vld [vmem:[#allocation23_spill] sm:$0xff]  ;;  %v1996_v45 = vmul.f32 %v1700_v19, %v1734_v15 }
 0x19f   :  { %2398 = vst [vmem:[#allocation9_spill] sm:$0xff] %v1968_v30  ;;  %v1980_v49 = vrot.slane %v692_v59, %v2401_v43  ;;  %v1984_v56 = vmul.f32 %v1734_v15, %v2402_v61  ;;  %v1988_v39 = vmul.f32 %v2403_v22, %v1734_v15  ;;  %v2404_v30 = vld [vmem:[#allocation25_spill] sm:$0xff] }
 0x1a0   :  { %v1992_v10 = vmul.f32 %v1734_v15, %v2404_v30 }
 0x1a1   :  { %v765_v54 = vadd.f32 %v1980_v49, %v1740_v34  ;;  %v766_v59 = vadd.f32 %v1980_v49, %v1744_v40  ;;  %v767_v43 = vadd.f32 %v1980_v49, %v1748_v3  ;;  %v768_v61 = vadd.f32 %v1980_v49, %v1752_v6 }
 0x1a2   :  { %v769_v22 = vadd.f32 %v1980_v49, %v1756_v53  ;;  %v770_v30 = vadd.f32 %v1980_v49, %v1760_v17  ;;  %v771_v19 = vadd.f32 %v1980_v49, %v1764_v16  ;;  %v772_v15 = vadd.f32 %v1980_v49, %v1768_v24 }
 0x1a3   :  { %v773_v34 = vadd.f32 %v1980_v49, %v1772_v20  ;;  %v774_v40 = vadd.f32 %v1980_v49, %v1776_v33  ;;  %v775_v3 = vadd.f32 %v1980_v49, %v1780_v28  ;;  %v776_v6 = vadd.f32 %v1980_v49, %v1784_v42  ;;  %829 = vst [vmem:[%s2321_s3] sm:$0xff] %v765_v54 }
 0x1a4   :  { %830 = vst [vmem:[%s2321_s3 + $0x8] sm:$0xff] %v766_v59  ;;  %831 = vst [vmem:[%s2321_s3 + $0x10] sm:$0xff] %v767_v43  ;;  %v777_v53 = vadd.f32 %v1980_v49, %v1788_v37  ;;  %v778_v17 = vadd.f32 %v1980_v49, %v1792_v51  ;;  %v779_v16 = vadd.f32 %v1980_v49, %v1796_v46  ;;  %v2409_v54 = vld [vmem:[#allocation6_spill] sm:$0xff]  ;;  %v2410_v43 = vld [vmem:[#allocation8_spill] sm:$0xff] }
 0x1a5   :  { %832 = vst [vmem:[%s2321_s3 + $0x18] sm:$0xff] %v768_v61  ;;  %v780_v24 = vadd.f32 %v1980_v49, %v1800_v60  ;;  %833 = vst [vmem:[%s2321_s3 + $0x20] sm:$0xff] %v769_v22  ;;  %v781_v20 = vadd.f32 %v1980_v49, %v1804_v55  ;;  %v782_v33 = vadd.f32 %v1980_v49, %v1808_v5  ;;  %v2411_v22 = vld [vmem:[#allocation7_spill] sm:$0xff] }
 0x1a6   :  { %834 = vst [vmem:[%s2321_s3 + $0x28] sm:$0xff] %v770_v30  ;;  %835 = vst [vmem:[%s2321_s3 + $0x30] sm:$0xff] %v771_v19  ;;  %v783_v28 = vadd.f32 %v1980_v49, %v1812_v0  ;;  %v784_v42 = vadd.f32 %v1980_v49, %v1816_v14  ;;  %v785_v37 = vadd.f32 %v1980_v49, %v1820_v9  ;;  %v2412_v19 = vld [vmem:[#allocation10_spill] sm:$0xff] }
 0x1a7   :  { %836 = vst [vmem:[%s2321_s3 + $0x38] sm:$0xff] %v772_v15  ;;  %837 = vst [vmem:[%s2321_s3 + $0x40] sm:$0xff] %v773_v34  ;;  %v786_v51 = vadd.f32 %v1980_v49, %v1824_v31  ;;  %v787_v46 = vadd.f32 %v1980_v49, %v1828_v23  ;;  %v788_v60 = vadd.f32 %v1980_v49, %v1832_v44  ;;  %v2413_v34 = vld [vmem:[#allocation9_spill] sm:$0xff] }
 0x1a8   :  { %838 = vst [vmem:[%s2321_s3 + $0x48] sm:$0xff] %v774_v40  ;;  %839 = vst [vmem:[%s2321_s3 + $0x50] sm:$0xff] %v775_v3  ;;  %v789_v55 = vadd.f32 %v1980_v49, %v1836_v36  ;;  %v790_v5 = vadd.f32 %v1980_v49, %v1840_v58  ;;  %v791_v0 = vadd.f32 %v1980_v49, %v1844_v50 }
 0x1a9   :  { %840 = vst [vmem:[%s2321_s3 + $0x58] sm:$0xff] %v776_v6  ;;  %841 = vst [vmem:[%s2321_s3 + $0x60] sm:$0xff] %v777_v53  ;;  %v792_v14 = vadd.f32 %v1980_v49, %v1848_v7  ;;  %v793_v9 = vadd.f32 %v1980_v49, %v1852_v63  ;;  %v794_v31 = vadd.f32 %v1980_v49, %v1856_v27 }
 0x1aa   :  { %842 = vst [vmem:[%s2321_s3 + $0x68] sm:$0xff] %v778_v17  ;;  %843 = vst [vmem:[%s2321_s3 + $0x70] sm:$0xff] %v779_v16  ;;  %v795_v23 = vadd.f32 %v1980_v49, %v1860_v13  ;;  %v796_v44 = vadd.f32 %v1980_v49, %v1864_v48  ;;  %v797_v36 = vadd.f32 %v1980_v49, %v1868_v35 }
 0x1ab   :  { %844 = vst [vmem:[%s2321_s3 + $0x78] sm:$0xff] %v780_v24  ;;  %845 = vst [vmem:[%s2321_s3 + $0x80] sm:$0xff] %v781_v20  ;;  %v798_v58 = vadd.f32 %v1980_v49, %v1872_v4  ;;  %v799_v50 = vadd.f32 %v1980_v49, %v1876_v57  ;;  %v800_v7 = vadd.f32 %v1980_v49, %v1880_v32 }
 0x1ac   :  { %846 = vst [vmem:[%s2321_s3 + $0x88] sm:$0xff] %v782_v33  ;;  %847 = vst [vmem:[%s2321_s3 + $0x90] sm:$0xff] %v783_v28  ;;  %v801_v63 = vadd.f32 %v1980_v49, %v1884_v12  ;;  %v802_v27 = vadd.f32 %v1980_v49, %v1888_v21  ;;  %v803_v13 = vadd.f32 %v1980_v49, %v1892_v18 }
 0x1ad   :  { %848 = vst [vmem:[%s2321_s3 + $0x98] sm:$0xff] %v784_v42  ;;  %849 = vst [vmem:[%s2321_s3 + $0xa0] sm:$0xff] %v785_v37  ;;  %v804_v48 = vadd.f32 %v1980_v49, %v1896_v62  ;;  %v805_v35 = vadd.f32 %v1980_v49, %v1900_v29  ;;  %v806_v4 = vadd.f32 %v1980_v49, %v1904_v11  ;;  %v2405_v11 = vld [vmem:[#allocation2_spill] sm:$0xff] }
 0x1ae   :  { %850 = vst [vmem:[%s2321_s3 + $0xa8] sm:$0xff] %v786_v51  ;;  %851 = vst [vmem:[%s2321_s3 + $0xb0] sm:$0xff] %v787_v46  ;;  %v807_v57 = vadd.f32 %v1980_v49, %v1908_v47  ;;  %v808_v32 = vadd.f32 %v1980_v49, %v1912_v8  ;;  %v809_v12 = vadd.f32 %v1980_v49, %v1916_v1  ;;  %v2406_v8 = vld [vmem:[#allocation3_spill] sm:$0xff] }
 0x1af   :  { %852 = vst [vmem:[%s2321_s3 + $0xb8] sm:$0xff] %v788_v60  ;;  %853 = vst [vmem:[%s2321_s3 + $0xc0] sm:$0xff] %v789_v55  ;;  %v810_v21 = vadd.f32 %v1980_v49, %v1920_v26  ;;  %v811_v18 = vadd.f32 %v1980_v49, %v1924_v25  ;;  %v812_v62 = vadd.f32 %v1980_v49, %v1928_v41  ;;  %v2407_v26 = vld [vmem:[#allocation4_spill] sm:$0xff]  ;;  %v2408_v41 = vld [vmem:[#allocation5_spill] sm:$0xff] }
 0x1b0   :  { %854 = vst [vmem:[%s2321_s3 + $0xc8] sm:$0xff] %v790_v5  ;;  %855 = vst [vmem:[%s2321_s3 + $0xd0] sm:$0xff] %v791_v0  ;;  %v813_v29 = vadd.f32 %v1980_v49, %v1932_v52  ;;  %v814_v47 = vadd.f32 %v1980_v49, %v2405_v11  ;;  %v815_v1 = vadd.f32 %v1980_v49, %v2406_v8 }
 0x1b1   :  { %856 = vst [vmem:[%s2321_s3 + $0xd8] sm:$0xff] %v792_v14  ;;  %857 = vst [vmem:[%s2321_s3 + $0xe0] sm:$0xff] %v793_v9  ;;  %v816_v25 = vadd.f32 %v1980_v49, %v2407_v26  ;;  %v817_v52 = vadd.f32 %v1980_v49, %v2408_v41  ;;  %v818_v59 = vadd.f32 %v1980_v49, %v2409_v54 }
 0x1b2   :  { %858 = vst [vmem:[%s2321_s3 + $0xe8] sm:$0xff] %v794_v31  ;;  %859 = vst [vmem:[%s2321_s3 + $0xf0] sm:$0xff] %v795_v23  ;;  %v819_v61 = vadd.f32 %v1980_v49, %v2410_v43  ;;  %v820_v30 = vadd.f32 %v1980_v49, %v2411_v22  ;;  %v821_v15 = vadd.f32 %v1980_v49, %v2412_v19 }
 0x1b3   :  { %860 = vst [vmem:[%s2321_s3 + $0xf8] sm:$0xff] %v796_v44  ;;  %861 = vst [vmem:[%s2321_s3 + $0x100] sm:$0xff] %v797_v36  ;;  %v822_v40 = vadd.f32 %v1980_v49, %v2413_v34  ;;  %v823_v3 = vadd.f32 %v1980_v49, %v1972_v2  ;;  %v824_v6 = vadd.f32 %v1980_v49, %v1976_v38 }
 0x1b4   :  { %862 = vst [vmem:[%s2321_s3 + $0x108] sm:$0xff] %v798_v58  ;;  %863 = vst [vmem:[%s2321_s3 + $0x110] sm:$0xff] %v799_v50  ;;  %v825_v2 = vadd.f32 %v1980_v49, %v1984_v56  ;;  %v826_v38 = vadd.f32 %v1980_v49, %v1988_v39  ;;  %v827_v53 = vadd.f32 %v1980_v49, %v1992_v10 }
 0x1b5   :  { %864 = vst [vmem:[%s2321_s3 + $0x118] sm:$0xff] %v800_v7  ;;  %865 = vst [vmem:[%s2321_s3 + $0x120] sm:$0xff] %v801_v63  ;;  %v828_v17 = vadd.f32 %v1980_v49, %v1996_v45 }
 0x1b6   :  { %866 = vst [vmem:[%s2321_s3 + $0x128] sm:$0xff] %v802_v27  ;;  %867 = vst [vmem:[%s2321_s3 + $0x130] sm:$0xff] %v803_v13 }
 0x1b7   :  { %868 = vst [vmem:[%s2321_s3 + $0x138] sm:$0xff] %v804_v48  ;;  %869 = vst [vmem:[%s2321_s3 + $0x140] sm:$0xff] %v805_v35 }
 0x1b8   :  { %870 = vst [vmem:[%s2321_s3 + $0x148] sm:$0xff] %v806_v4  ;;  %871 = vst [vmem:[%s2321_s3 + $0x150] sm:$0xff] %v807_v57 }
 0x1b9   :  { %872 = vst [vmem:[%s2321_s3 + $0x158] sm:$0xff] %v808_v32  ;;  %873 = vst [vmem:[%s2321_s3 + $0x160] sm:$0xff] %v809_v12 }
 0x1ba   :  { %874 = vst [vmem:[%s2321_s3 + $0x168] sm:$0xff] %v810_v21  ;;  %875 = vst [vmem:[%s2321_s3 + $0x170] sm:$0xff] %v811_v18 }
 0x1bb   :  { %876 = vst [vmem:[%s2321_s3 + $0x178] sm:$0xff] %v812_v62  ;;  %877 = vst [vmem:[%s2321_s3 + $0x180] sm:$0xff] %v813_v29 }
 0x1bc   :  { %878 = vst [vmem:[%s2321_s3 + $0x188] sm:$0xff] %v814_v47  ;;  %879 = vst [vmem:[%s2321_s3 + $0x190] sm:$0xff] %v815_v1 }
 0x1bd   :  { %880 = vst [vmem:[%s2321_s3 + $0x198] sm:$0xff] %v816_v25  ;;  %881 = vst [vmem:[%s2321_s3 + $0x1a0] sm:$0xff] %v817_v52 }
 0x1be   :  { %882 = vst [vmem:[%s2321_s3 + $0x1a8] sm:$0xff] %v818_v59  ;;  %883 = vst [vmem:[%s2321_s3 + $0x1b0] sm:$0xff] %v819_v61 }
 0x1bf   :  { %884 = vst [vmem:[%s2321_s3 + $0x1b8] sm:$0xff] %v820_v30  ;;  %885 = vst [vmem:[%s2321_s3 + $0x1c0] sm:$0xff] %v821_v15 }
 0x1c0   :  { %886 = vst [vmem:[%s2321_s3 + $0x1c8] sm:$0xff] %v822_v40  ;;  %887 = vst [vmem:[%s2321_s3 + $0x1d0] sm:$0xff] %v823_v3 }
 0x1c1   :  { %888 = vst [vmem:[%s2321_s3 + $0x1d8] sm:$0xff] %v824_v6  ;;  %889 = vst [vmem:[%s2321_s3 + $0x1e0] sm:$0xff] %v825_v2 }
 0x1c2   :  { %890 = vst [vmem:[%s2321_s3 + $0x1e8] sm:$0xff] %v826_v38  ;;  %891 = vst [vmem:[%s2321_s3 + $0x1f0] sm:$0xff] %v827_v53 }
 0x1c3   :  { %892 = vst [vmem:[%s2321_s3 + $0x1f8] sm:$0xff] %v828_v17 }

</bundles_post_ra>
